<compile_context>
chip_gen: v7x
topology: tpu7x:2x2x1
jax: 0.10.0
libtpu: 0.0.40
codegen_flags: <defaults>
</compile_context>

<pallas_src>
import math

import jax
import jax.numpy as jnp
from jax.experimental import pallas as pl
from jax.experimental.pallas import tpu as pltpu

_EXP_P10 = math.exp(10.0)   # exp(-reward) when reward == -10  (touching, not between)
_EXP_M10 = math.exp(-10.0)  # exp(-reward) when reward == +10  (between, not touching)


def _reward_kernel(s_ref, out_ref):
    # s_ref:   SMEM (4,) f32 -> [vae_loss, euclid_dist, is_touching, is_between]
    # out_ref: SMEM (1,) f32 -> loss
    vae = s_ref[0]
    dist = s_ref[1]
    t = s_ref[2]
    b = s_ref[3]

    # reward = -t*10 + b*10  =>  exp(-reward) = exp(10*(t - b)).
    # Flags are 0/1 (float(bool) in the torch module), so t - b in {-1, 0, +1} and the
    # transcendental collapses to a scalar 3-way select (stays entirely on sregs).
    d = t - b
    exp_reward = jnp.where(d > 0.5, _EXP_P10,
                           jnp.where(d < -0.5, _EXP_M10, 1.0)).astype(jnp.float32)

    out_ref[0] = vae + dist + exp_reward


@jax.jit
def reward_function(vae_loss, euclid_dist, is_touching, is_between):
    """Pallas equivalent of RewardFunction.forward.

    vae_loss, euclid_dist: scalar or shape-(1,) float32 arrays.
    is_touching, is_between: runtime 0/1 values (bool or float arrays/scalars).
    Returns shape-(1,) float32 loss (matches the torch 1-element tensor broadcast).
    """
    scalars = jnp.stack([
        jnp.asarray(vae_loss, jnp.float32).reshape(()),
        jnp.asarray(euclid_dist, jnp.float32).reshape(()),
        jnp.asarray(is_touching, jnp.float32).reshape(()),
        jnp.asarray(is_between, jnp.float32).reshape(()),
    ])

    out = pl.pallas_call(
        _reward_kernel,
        out_shape=jax.ShapeDtypeStruct((1,), jnp.float32),
        in_specs=[
            pl.BlockSpec(memory_space=pltpu.MemorySpace.SMEM),   # all scalars
        ],
        out_specs=pl.BlockSpec(memory_space=pltpu.MemorySpace.SMEM),  # scalar result
    )(scalars)
    return out  # shape (1,)


if __name__ == "__main__":
    key = jax.random.PRNGKey(0)
    k1, k2 = jax.random.split(key)
    vae_loss = jax.random.uniform(k1, (1,), dtype=jnp.float32)      # e.g. VAE recon loss
    euclid_dist = jax.random.uniform(k2, (1,), dtype=jnp.float32)   # e.g. bird-gap distance

    # Flags as runtime arrays -> no retrace/recompile when they flip.
    is_touching = jnp.asarray(True)
    is_between = jnp.asarray(False)

    loss = reward_function(vae_loss, euclid_dist, is_touching, is_between)
    jax.block_until_ready(loss)

    # Reference in plain JAX (uses the real exp).
    reward = (-is_touching.astype(jnp.float32) * 10.0
              + is_between.astype(jnp.float32) * 10.0)
    ref = vae_loss + euclid_dist + jnp.exp(-reward)
    assert loss.shape == (1,), loss.shape
    assert jnp.allclose(loss, ref, rtol=1e-5, atol=1e-5), (loss, ref)

    # Flip the flags at runtime — same compiled kernel, different result.
    loss2 = reward_function(vae_loss, euclid_dist, jnp.asarray(False), jnp.asarray(True))
    jax.block_until_ready(loss2)
    ref2 = vae_loss + euclid_dist + jnp.exp(jnp.float32(-10.0))
    assert jnp.allclose(loss2, ref2, rtol=1e-5, atol=1e-5), (loss2, ref2)

    print("KERNEL_OK")
</pallas_src>

<mosaic_0001>
module attributes {stable_mosaic.version = 11 : i64} {
  func.func @_reward_kernel(%arg0: memref<4xf32, #tpu.memory_space<smem>>, %arg1: memref<1xf32, #tpu.memory_space<smem>>) attributes {dimension_semantics = [], scalar_prefetch = 0 : i64, scratch_operands = 0 : i64, tpu.core_type = #tpu.core_type<tc>} {
    %c0 = arith.constant 0 : index
    %0 = memref.load %arg0[%c0] : memref<4xf32, #tpu.memory_space<smem>>
    %c1 = arith.constant 1 : index
    %1 = memref.load %arg0[%c1] : memref<4xf32, #tpu.memory_space<smem>>
    %c2 = arith.constant 2 : index
    %2 = memref.load %arg0[%c2] : memref<4xf32, #tpu.memory_space<smem>>
    %c3 = arith.constant 3 : index
    %3 = memref.load %arg0[%c3] : memref<4xf32, #tpu.memory_space<smem>>
    %4 = arith.subf %2, %3 : f32
    %cst = arith.constant 5.000000e-01 : f32
    %5 = arith.cmpf ogt, %4, %cst : f32
    %cst_0 = arith.constant -5.000000e-01 : f32
    %6 = arith.cmpf olt, %4, %cst_0 : f32
    %cst_1 = arith.constant 4.5399931E-5 : f32
    %cst_2 = arith.constant 1.000000e+00 : f32
    %7 = arith.select %6, %cst_1, %cst_2 : f32
    %cst_3 = arith.constant 22026.4648 : f32
    %8 = arith.select %5, %cst_3, %7 : f32
    %9 = arith.addf %0, %1 : f32
    %10 = arith.addf %9, %8 : f32
    %c0_4 = arith.constant 0 : index
    %11 = memref.load %arg1[%c0_4] : memref<1xf32, #tpu.memory_space<smem>>
    memref.store %10, %arg1[%c0_4] : memref<1xf32, #tpu.memory_space<smem>>
    return
  }
}

</mosaic_0001>

<bundles_post_ra>
// kernel: reward_function.1
= control target key start
LH: loop header
LB: loop body
LE: loop exit
PB: predicated region body
PF: predicated region fallthrough
CT: control target
= control target key end

     0   :  { %6 = vsyncpa [#allocation4], 0  ;;  %s107_s0 = inlined_call_operand.vmem [shape: f32[4], index: 0, kind: input, shape index: {}]   ;;  %s108_s1 = inlined_call_operand.hbm [shape: f32[1], index: 1, kind: output, shape index: {}]  }
   0x1   :  { %7 = vsyncpa [#allocation3], 0  ;;  %s14_s8 = sshll.u32 %s107_s0, 4  ;;  %s15_s8 = int_to_ptr.vmem [resolvable:$true] %s14_s8 }
   0x2   :  { %s54_s9 = scalar_lea.vmem %s15_s8, 16  ;;  %p59_p1 = scmp.lt.s32.totalorder %s15_s8, %s15_s8 }
   0x3   :  { %p55_p0 = scmp.ne.s32.totalorder %s15_s8, %s54_s9  ;;  %p60_p2 = scmp.lt.s32.totalorder %s54_s9, %s54_s9 }
   0x5   :  { %p61_p3 = por %p60_p2, %p59_p1 }
   0x7   :  { %p62_p4 = pnand %p61_p3, %p55_p0 }
   0x9   :  { %65 = shalt.err (!%p62_p4)
}
   0xa   :  { %s80_s10 = smov [#allocation2]  }
   0xb   :  { %17 = dma.vmem_to_smem %s15_s8, 16, %s80_s10, [#allocation4]  }
   0xc   :  { %76 = dma.done.wait [#allocation4], 16  }
   0xd   :  { %77 = vsyncadd [#allocation4], 4294967280 }
   0xe   :  { %21 = sfence }
   0xf   :  { %s50_s11 = sld [smem:[#allocation2 + $0x2]]  ;;  %s51_s12 = sld [smem:[#allocation2 + $0x3]] }
  0x10   :  { %s22_s13 = sld [smem:[#allocation2]]  ;;  %s49_s14 = sld [smem:[#allocation2 + $0x1]] }
  0x11   :  { %s66_s20 = scalar_lea.hbm %s108_s1, 16 }
  0x12   :  { %p67_p7 = scmp.ne.s32.totalorder %s108_s1, %s66_s20  ;;  %p70_p8 = scmp.lt.u32.totalorder %s66_s20, %s108_s1 }
  0x14   :  { %p72_p9 = pnand %p70_p8, %p67_p7 }
  0x15   :  { %s26_s15 = ssub.f32 %s50_s11, %s51_s12 }
  0x16   :  { %s31_s0 = sadd.f32 %s49_s14, %s22_s13 }
  0x17   :  { %p27_p5 = scmp.gt.f32.partialorder %s26_s15, 0.5  ;;  %p28_p6 = scmp.lt.f32.partialorder %s26_s15, -0.5 }
  0x19   :  { %s29_s16 = scalar_select %p28_p6, 4.539993e-05, 1.0 }
  0x1b   :  { %s110_s16 = smov (%p27_p5, %s29_s16), 22026.465 }
  0x1c   :  { %s32_s17 = sadd.f32 %s31_s0, %s110_s16 }
  0x1e   :  { %34 = sst [smem:[#allocation5]] %s32_s17 }
  0x1f   :  { %75 = shalt.err (!%p72_p9)
}
  0x20   :  { %s81_s25 = smov [#allocation5]  }
  0x21   :  { %42 = dma.smem_to_hbm %s81_s25, 16, %s108_s1, [#allocation3]  }
  0x22   :  { %78 = dma.done.wait [#allocation3], 16  }
  0x23   :  { %79 = vsyncadd [#allocation3], 4294967280 }
  0x24   :  { %46 = sfence }
  0x25   :  { %47 = vsyncpa [#allocation3], 1 }
  0x26   :  { %48 = vsyncpa [#allocation4], 1 }

</bundles_post_ra>
